<compile_context>
chip_gen: v7x
topology: tpu7x:2x2x1
jax: 0.10.0
libtpu: 0.0.40
codegen_flags: <defaults>
</compile_context>

<pallas_src>
import jax
import jax.numpy as jnp
from jax.experimental import pallas as pl
from jax.experimental.pallas import tpu as pltpu


def policy_kernel(s_ref, p_ref, o_ref):
    # s_ref: SMEM (8,)      -- [x0, x1, x2, x3, bdiff, 0, 0, 0]
    # p_ref: VMEM (8, 128)  -- rows 0-3 w1, row 4 b1, row 5 wdiff, row 6 onehot
    # o_ref: VMEM (1, 128)  -- lane-dense output row; probs live in [0, 0:2]

    # ---- layer 1: 4 broadcast FMAs on the VPU (no MXU round-trip) ----
    h = (s_ref[0] * p_ref[0:1, :]
         + s_ref[1] * p_ref[1:2, :]
         + s_ref[2] * p_ref[2:3, :]
         + s_ref[3] * p_ref[3:4, :]
         + p_ref[4:5, :])                                   # (1, 128)
    h = jnp.maximum(h, 0.0)

    # ---- layer 2 (difference form): one VPU mul + one XLU lane reduce ----
    # d = l0 - l1, with wdiff = w2[0,:]-w2[1,:] and bdiff = b2[0]-b2[1]
    d = jnp.sum(h * p_ref[5:6, :], axis=-1, keepdims=True) + s_ref[4]  # (1, 1)

    # ---- 2-class softmax == sigmoid of the logit difference (exact) ----
    p0 = jax.nn.sigmoid(d)                                  # (1, 1)
    p1 = 1.0 - p0

    # ---- lane-dense (1, 128) row: lane 0 -> p0, all other lanes -> p1 ----
    o_ref[...] = p1 + (p0 - p1) * p_ref[6:7, :]


@jax.jit
def policy_forward(x, smem_base, packed_params):
    """x: (4,) float32 observation -> (2,) action probabilities."""
    # Per-call SMEM packing: only the 4 observation scalars change.
    s = smem_base.at[0:4].set(x.astype(jnp.float32))
    out = pl.pallas_call(
        policy_kernel,
        out_shape=jax.ShapeDtypeStruct((1, 128), jnp.float32),
        in_specs=[
            pl.BlockSpec(memory_space=pltpu.MemorySpace.SMEM),   # packed scalars
            pl.BlockSpec(memory_space=pltpu.MemorySpace.VMEM),   # packed (8,128)
        ],
        out_specs=pl.BlockSpec(memory_space=pltpu.MemorySpace.VMEM),
    )(s, packed_params)
    return out[0, :2]


def init_params(key):
    """Deterministic init matching nn.Linear(4,128) / nn.Linear(128,2).

    w1 is stored (in, out) = (4, 128); w2 is stored transposed, lane-dense,
    as (out, in) = (2, 128). All f32 (v5e VPU has no bf16 path; this kernel
    is launch-bound, not bandwidth-bound).
    """
    k1, k2, k3, k4 = jax.random.split(key, 4)
    lim1 = 1.0 / jnp.sqrt(4.0)     # torch default U(-1/sqrt(fan_in), ...)
    lim2 = 1.0 / jnp.sqrt(128.0)
    w1 = jax.random.uniform(k1, (4, 128), jnp.float32, -lim1, lim1)
    b1 = jax.random.uniform(k2, (128,), jnp.float32, -lim1, lim1)
    w2t = jax.random.uniform(k3, (2, 128), jnp.float32, -lim2, lim2)
    b2 = jax.random.uniform(k4, (2,), jnp.float32, -lim2, lim2)
    return w1, b1, w2t, b2


def pack_params(w1, b1, w2t, b2):
    """One-time constant transforms (hoisted out of the per-step forward)."""
    wdiff = w2t[0, :] - w2t[1, :]                       # (128,)
    bdiff = b2[0] - b2[1]                               # scalar
    onehot = jnp.zeros((128,), jnp.float32).at[0].set(1.0)

    packed = jnp.zeros((8, 128), jnp.float32)
    packed = packed.at[0:4, :].set(w1.astype(jnp.float32))
    packed = packed.at[4, :].set(b1.astype(jnp.float32))
    packed = packed.at[5, :].set(wdiff)
    packed = packed.at[6, :].set(onehot)

    smem_base = jnp.zeros((8,), jnp.float32).at[4].set(bdiff)
    return packed, smem_base


if __name__ == "__main__":
    key = jax.random.PRNGKey(0)
    pkey, xkey = jax.random.split(key)
    w1, b1, w2t, b2 = init_params(pkey)
    packed_params, smem_base = pack_params(w1, b1, w2t, b2)

    # single CartPole-like observation, shape (4,)
    x = jax.random.normal(xkey, (4,), jnp.float32)

    probs = policy_forward(x, smem_base, packed_params)
    probs = jax.block_until_ready(probs)

    # reference in plain JAX (matches torch: relu(l1) -> l2 -> softmax(dim=0))
    h_ref = jnp.maximum(x @ w1 + b1, 0.0)
    logits_ref = h_ref @ w2t.T + b2
    probs_ref = jax.nn.softmax(logits_ref, axis=0)

    assert probs.shape == (2,)
    assert jnp.allclose(probs, probs_ref, atol=1e-5), (probs, probs_ref)
    assert jnp.allclose(jnp.sum(probs), 1.0, atol=1e-5)

    print("KERNEL_OK")
</pallas_src>

<mosaic_0001>
module attributes {stable_mosaic.version = 11 : i64} {
  func.func @policy_kernel(%arg0: memref<8xf32, #tpu.memory_space<smem>>, %arg1: memref<8x128xf32, #tpu.memory_space<vmem>>, %arg2: memref<1x128xf32, #tpu.memory_space<vmem>>) attributes {dimension_semantics = [], scalar_prefetch = 0 : i64, scratch_operands = 0 : i64, tpu.core_type = #tpu.core_type<tc>} {
    %c0 = arith.constant 0 : index
    %0 = memref.load %arg0[%c0] : memref<8xf32, #tpu.memory_space<smem>>
    %c0_0 = arith.constant 0 : index
    %c0_1 = arith.constant 0 : index
    %1 = vector.load %arg1[%c0_0, %c0_1] : memref<8x128xf32, #tpu.memory_space<vmem>>, vector<1x128xf32>
    %2 = vector.broadcast %0 : f32 to vector<1x128xf32>
    %3 = arith.mulf %2, %1 : vector<1x128xf32>
    %c1 = arith.constant 1 : index
    %4 = memref.load %arg0[%c1] : memref<8xf32, #tpu.memory_space<smem>>
    %c1_2 = arith.constant 1 : index
    %c0_3 = arith.constant 0 : index
    %5 = vector.load %arg1[%c1_2, %c0_3] : memref<8x128xf32, #tpu.memory_space<vmem>>, vector<1x128xf32>
    %6 = vector.broadcast %4 : f32 to vector<1x128xf32>
    %7 = arith.mulf %6, %5 : vector<1x128xf32>
    %8 = arith.addf %3, %7 : vector<1x128xf32>
    %c2 = arith.constant 2 : index
    %9 = memref.load %arg0[%c2] : memref<8xf32, #tpu.memory_space<smem>>
    %c2_4 = arith.constant 2 : index
    %c0_5 = arith.constant 0 : index
    %10 = vector.load %arg1[%c2_4, %c0_5] : memref<8x128xf32, #tpu.memory_space<vmem>>, vector<1x128xf32>
    %11 = vector.broadcast %9 : f32 to vector<1x128xf32>
    %12 = arith.mulf %11, %10 : vector<1x128xf32>
    %13 = arith.addf %8, %12 : vector<1x128xf32>
    %c3 = arith.constant 3 : index
    %14 = memref.load %arg0[%c3] : memref<8xf32, #tpu.memory_space<smem>>
    %c3_6 = arith.constant 3 : index
    %c0_7 = arith.constant 0 : index
    %15 = vector.load %arg1[%c3_6, %c0_7] : memref<8x128xf32, #tpu.memory_space<vmem>>, vector<1x128xf32>
    %16 = vector.broadcast %14 : f32 to vector<1x128xf32>
    %17 = arith.mulf %16, %15 : vector<1x128xf32>
    %18 = arith.addf %13, %17 : vector<1x128xf32>
    %c4 = arith.constant 4 : index
    %c0_8 = arith.constant 0 : index
    %19 = vector.load %arg1[%c4, %c0_8] : memref<8x128xf32, #tpu.memory_space<vmem>>, vector<1x128xf32>
    %20 = arith.addf %18, %19 : vector<1x128xf32>
    %cst = arith.constant 0.000000e+00 : f32
    %21 = vector.broadcast %cst : f32 to vector<1x128xf32>
    %22 = arith.maximumf %20, %21 : vector<1x128xf32>
    %c5 = arith.constant 5 : index
    %c0_9 = arith.constant 0 : index
    %23 = vector.load %arg1[%c5, %c0_9] : memref<8x128xf32, #tpu.memory_space<vmem>>, vector<1x128xf32>
    %24 = arith.mulf %22, %23 : vector<1x128xf32>
    %cst_10 = arith.constant dense<0.000000e+00> : vector<1xf32>
    %25 = vector.multi_reduction <add>, %24, %cst_10 [1] : vector<1x128xf32> to vector<1xf32>
    %26 = vector.shape_cast %25 : vector<1xf32> to vector<1x1xf32>
    %c4_11 = arith.constant 4 : index
    %27 = memref.load %arg0[%c4_11] : memref<8xf32, #tpu.memory_space<smem>>
    %28 = vector.broadcast %27 : f32 to vector<1x1xf32>
    %29 = arith.addf %26, %28 : vector<1x1xf32>
    %30 = arith.negf %29 : vector<1x1xf32>
    %31 = math.exp %30 : vector<1x1xf32>
    %cst_12 = arith.constant 1.000000e+00 : f32
    %32 = vector.broadcast %cst_12 : f32 to vector<1x1xf32>
    %33 = arith.addf %32, %31 : vector<1x1xf32>
    %34 = arith.divf %32, %33 : vector<1x1xf32>
    %cst_13 = arith.constant 1.000000e+00 : f32
    %35 = vector.broadcast %cst_13 : f32 to vector<1x1xf32>
    %36 = arith.subf %35, %34 : vector<1x1xf32>
    %37 = arith.subf %34, %36 : vector<1x1xf32>
    %c6 = arith.constant 6 : index
    %c0_14 = arith.constant 0 : index
    %38 = vector.load %arg1[%c6, %c0_14] : memref<8x128xf32, #tpu.memory_space<vmem>>, vector<1x128xf32>
    %39 = vector.broadcast %37 : vector<1x1xf32> to vector<1x128xf32>
    %40 = arith.mulf %39, %38 : vector<1x128xf32>
    %41 = vector.broadcast %36 : vector<1x1xf32> to vector<1x128xf32>
    %42 = arith.addf %41, %40 : vector<1x128xf32>
    %c0_15 = arith.constant 0 : index
    %c0_16 = arith.constant 0 : index
    %43 = vector.load %arg2[%c0_15, %c0_16] : memref<1x128xf32, #tpu.memory_space<vmem>>, vector<1x128xf32>
    tpu.vector_store %arg2[%c0_15, %c0_16], %42 {strides = array<i32>} : memref<1x128xf32, #tpu.memory_space<vmem>>, vector<1x128xf32>,
    return
  }
}

</mosaic_0001>

<bundles_post_ra>
// kernel: policy_forward.1
= control target key start
LH: loop header
LB: loop body
LE: loop exit
PB: predicated region body
PF: predicated region fallthrough
CT: control target
= control target key end

     0   :  { %7 = vsyncpa [#allocation4], 0  ;;  %s169_s0 = inlined_call_operand.vmem [shape: f32[8], index: 0, kind: input, shape index: {}]   ;;  %s170_s1 = inlined_call_operand.hbm [shape: f32[8,128], index: 1, kind: input, shape index: {}]   ;;  %s171_s2 = inlined_call_operand.vmem [shape: f32[1,128], index: 2, kind: output, shape index: {}]  }
   0x1   :  { %s15_s11 = sshll.u32 %s169_s0, 4  ;;  %s16_s11 = int_to_ptr.vmem [resolvable:$true] %s15_s11 }
   0x2   :  { %8 = vsyncpa [#allocation3], 0  ;;  %s96_s12 = scalar_lea.vmem %s16_s11, 16  ;;  %p101_p1 = scmp.lt.s32.totalorder %s16_s11, %s16_s11 }
   0x3   :  { %p97_p0 = scmp.ne.s32.totalorder %s16_s11, %s96_s12  ;;  %p102_p2 = scmp.lt.s32.totalorder %s96_s12, %s96_s12 }
   0x5   :  { %p103_p3 = por %p102_p2, %p101_p1 }
   0x7   :  { %p104_p4 = pnand %p103_p3, %p97_p0 }
   0x9   :  { %107 = shalt.err (!%p104_p4)
}
   0xa   :  { %s134_s13 = smov [#allocation2]   ;;  %s135_s14 = smov [#allocation5]  }
   0xb   :  { %18 = dma.vmem_to_smem %s16_s11, 16, %s134_s13, [#allocation4]  }
   0xc   :  { %s25_s15 = sshll.u32 %s135_s14, 4  ;;  %s108_s18 = scalar_lea.hbm %s170_s1, 128  ;;  %s26_s15 = int_to_ptr.vmem [resolvable:$true] %s25_s15 }
   0xd   :  { %p109_p5 = scmp.ne.s32.totalorder %s170_s1, %s108_s18  ;;  %p112_p6 = scmp.lt.u32.totalorder %s108_s18, %s170_s1 }
   0xf   :  { %p114_p7 = pnand %p112_p6, %p109_p5 }
  0x11   :  { %117 = shalt.err (!%p114_p7)
}
  0x12   :  { %s118_s22 = scalar_lea.vmem %s26_s15, 128  ;;  %p123_p9 = scmp.lt.s32.totalorder %s26_s15, %s26_s15 }
  0x13   :  { %p119_p8 = scmp.ne.s32.totalorder %s26_s15, %s118_s22  ;;  %p124_p10 = scmp.lt.s32.totalorder %s118_s22, %s118_s22 }
  0x15   :  { %p125_p11 = por %p124_p10, %p123_p9 }
  0x17   :  { %p126_p12 = pnand %p125_p11, %p119_p8 }
  0x19   :  { %129 = shalt.err (!%p126_p12)
}
  0x1a   :  { %28 = dma.hbm_to_vmem [thread:$0]  %s170_s1, 128, %s26_s15, [#allocation3]  }
  0x1b   :  { %130 = dma.done.wait [#allocation4], 16  }
  0x1c   :  { %131 = vsyncadd [#allocation4], 4294967280 }
  0x1d   :  { %132 = dma.done.wait [#allocation3], 128  }
  0x1e   :  { %133 = vsyncadd [#allocation3], 4294967168 }
  0x1f   :  { %35 = sfence }
  0x20   :  { %s36_s25 = sld [smem:[#allocation2]]  ;;  %s85_s26 = sld [smem:[#allocation2 + $0x1]]  ;;  %v37_v0 = vld [vmem:[#allocation5] sm:$0x1]  ;;  %v41_v1 = vld [vmem:[#allocation5 + $0x1] sm:$0x1] }
  0x21   :  { %s86_s27 = sld [smem:[#allocation2 + $0x2]]  ;;  %s87_s28 = sld [smem:[#allocation2 + $0x3]]  ;;  %v46_v2 = vld [vmem:[#allocation5 + $0x2] sm:$0x1]  ;;  %v51_v5 = vld [vmem:[#allocation5 + $0x3] sm:$0x1] }
  0x22   :  { %v55_v14 = vld [vmem:[#allocation5 + $0x4] sm:$0x1]  ;;  %v58_v17 = vld [vmem:[#allocation5 + $0x5] sm:$0x1]  ;;  %vm60_vm0 = vcmask 1040384   ;;  %s88_s1 = sld [smem:[#allocation2 + $0x4]] }
  0x23   :  { %v75_v29 = vld [vmem:[#allocation5 + $0x6] sm:$0x1] }
  0x26   :  { %v38_v3 = vstv %s36_s25  ;;  %v42_v4 = vstv %s85_s26 }
  0x27   :  { %v39_v6 = vmul.f32 %v38_v3, %v37_v0  ;;  %v43_v7 = vmul.f32 %v42_v4, %v41_v1  ;;  %v47_v8 = vstv %s86_s27  ;;  %v52_v10 = vstv %s87_s28 }
  0x28   :  { %v48_v9 = vmul.f32 %v47_v8, %v46_v2  ;;  %v53_v12 = vmul.f32 %v52_v10, %v51_v5  ;;  %v65_v21 = vstv %s88_s1 }
  0x29   :  { %v44_v11 = vadd.f32 %v43_v7, %v39_v6 }
  0x2b   :  { %v49_v13 = vadd.f32 %v48_v9, %v44_v11 }
  0x2d   :  { %v54_v15 = vadd.f32 %v53_v12, %v49_v13 }
  0x2f   :  { %v56_v16 = vadd.f32 %v55_v14, %v54_v15 }
  0x31   :  { %v57_v18 = vmax.f32 %v56_v16, 0.0 }
  0x33   :  { %v59_v19 = vmul.f32 %v58_v17, %v57_v18 }
  0x35   :  { %v61_v20 = vsel %vm60_vm0, %v59_v19, 0.0 }
  0x36   :  { %62 = vadd.xlane.f32.xlu0 %v61_v20 }
  0xc3   :  { %v63_v22 = vpop.xlane.xlu0 %62 }
  0xc4   :  { %v66_v23 = vadd.f32 %v65_v21, %v63_v22 }
  0xc6   :  { %v89_v24 = vmul.f32 -1.442695, %v66_v23 }
  0xc8   :  { %92 = vpow2.f32 %v89_v24 }
  0xd2   :  { %v93_v25 = vpop.eup %92 }
  0xd3   :  { %v70_v26 = vadd.f32 1.0, %v93_v25 }
  0xd5   :  { %94 = vrcp.f32 %v70_v26 }
  0xdf   :  { %v95_v27 = vpop.eup %94 }
  0xe0   :  { %v73_v28 = vsub.f32 1.0, %v95_v27 }
  0xe2   :  { %v74_v30 = vsub.f32 %v95_v27, %v73_v28 }
  0xe4   :  { %v76_v31 = vmul.f32 %v75_v29, %v74_v30 }
  0xe6   :  { %v77_v32 = vadd.f32 %v76_v31, %v73_v28 }
  0xe8   :  { %78 = vst [vmem:[%s171_s2] sm:$0x1] %v77_v32 }
  0xe9   :  { %83 = vsyncpa [#allocation3], 1 }
  0xea   :  { %84 = vsyncpa [#allocation4], 1 }

</bundles_post_ra>
